<compile_context>
chip_gen: v6e
topology: v6e:2x2x1
jax: 0.10.0
libtpu: 0.0.40
codegen_flags: <defaults>
</compile_context>

<pallas_src>
import functools

import jax
import jax.numpy as jnp
import numpy as np
from jax.experimental import pallas as pl
from jax.experimental.pallas import tpu as pltpu


def _upsample_kernel(xs_ref, w_ref, b_ref, o_ref, *, bp, W, C, merged):
    """One (batch, row-block) grid step.

    xs_ref: (1, bp+2, W+2, C)  halo slab of the 1-padded NHWC input (rows i*bp .. i*bp+bp+2)
    merged (C < 128):
      w_ref: (2, 6C, 2C)   per ah; rows ordered (dh, s, ci), cols ordered (aw, co)
      b_ref: (1, 2C)       bias tiled over aw
    exact (C >= 128):
      w_ref: (2, 2, 4C, C) per (ah, aw); rows ordered (dh, dw, ci)
      b_ref: (1, C)
    o_ref: (1, bp, 2, W, 2C)  dims (slab, p, ah, q, (aw, co)); row-major it IS the
           interleaved NHWC output slab, so no pixel-shuffle copy is needed outside.
    """
    xs = xs_ref[0]                                                   # (bp+2, W+2, C)
    # Shared column im2col: the 9 unique 3x3 taps collapse to 3 lane-shifted slices here
    # plus cheap row (sublane) slices below — built once, reused by both ah parities.
    cs = jnp.concatenate([xs[:, s:s + W, :] for s in range(3)], axis=-1)  # (bp+2, W, 3C)

    for ah in range(2):
        if merged:
            # one dot covers both aw parities: K = 6C, N = 2C (lane-denser than 4 small dots)
            patch = jnp.concatenate([cs[ah:ah + bp], cs[ah + 1:ah + 1 + bp]],
                                    axis=-1)                         # (bp, W, 6C) (dh,s,ci)
            acc = jnp.dot(patch.reshape(bp * W, 6 * C), w_ref[ah],
                          preferred_element_type=jnp.float32)        # (bp*W, 2C) f32
            acc = acc + b_ref[...]
            o_ref[0, :, ah, :, :] = acc.reshape(bp, W, 2 * C).astype(o_ref.dtype)
        else:
            # exact per-parity dots when the MXU is actually loaded (avoids 1.5x extra MACs)
            for aw in range(2):
                sub = cs[:, :, aw * C:(aw + 2) * C]                  # columns s in {aw, aw+1}
                patch = jnp.concatenate([sub[ah:ah + bp], sub[ah + 1:ah + 1 + bp]],
                                        axis=-1)                     # (bp, W, 4C) (dh,dw,ci)
                acc = jnp.dot(patch.reshape(bp * W, 4 * C), w_ref[ah, aw],
                              preferred_element_type=jnp.float32)    # (bp*W, C) f32
                acc = acc + b_ref[...]
                o_ref[0, :, ah, :, aw * C:(aw + 1) * C] = (
                    acc.reshape(bp, W, C).astype(o_ref.dtype))


def upsample_forward(x, t, weight, bias, *, compute_dtype=jnp.bfloat16,
                     max_block_rows=None):
    """Upsample.forward: ConvTranspose2d(C, C, kernel_size=4, stride=2, padding=1).

    x:      (N, C, H, W) NCHW;  t: unused;  weight: (Cin, Cout, 4, 4);  bias: (C,)
    returns (N, C, 2H, 2W) NCHW
    """
    del t
    N, C, H, W = x.shape
    assert weight.shape == (C, C, 4, 4)
    cdt = jnp.dtype(compute_dtype)
    out_dtype = x.dtype
    merged = C < 128

    # ---- generation-aware VMEM budget -> row-block size bp (divisor of H) ----
    try:
        vmem_cap = int(getattr(pltpu.get_tpu_info(), "vmem_capacity_bytes",
                               64 * 1024 * 1024))
    except Exception:
        vmem_cap = 64 * 1024 * 1024                 # conservative v7x per-TC floor
    vmem_limit = (min(vmem_cap, 128 * 1024 * 1024) * 3) // 4
    budget = vmem_limit // 2                        # headroom for compiler temporaries
    in_b = cdt.itemsize
    out_b = jnp.dtype(out_dtype).itemsize

    def _need(bpc):
        slab = (bpc + 2) * (W + 2) * C * in_b       # input block
        outb = bpc * 2 * W * 2 * C * out_b          # output block
        cs_b = (bpc + 2) * W * 3 * C * in_b         # shared column im2col
        patch = bpc * W * 6 * C * in_b              # per-ah patch
        accs = bpc * W * 2 * C * 4                  # f32 dot result
        wgt = 4 * 4 * C * C * in_b
        return 2 * slab + 2 * outb + cs_b + patch + 2 * accs + wgt

    divisors = [d for d in range(1, H + 1) if H % d == 0]
    cap = H if max_block_rows is None else max(1, int(max_block_rows))
    cands = [d for d in divisors if d <= cap and _need(d) <= budget]
    bp = max(cands) if cands else 1
    if N * (H // bp) < 2:                           # keep both v7x TensorCores busy
        smaller = [d for d in divisors if d < H]
        if smaller:
            bp = max(smaller)
    nb = H // bp

    # ---- NHWC + 1-pad (only wrapper-side prep; no pixel-shuffle copies on the way out) ----
    x_nhwc = jnp.transpose(x, (0, 2, 3, 1)).astype(cdt)              # (N, H, W, C)
    xp = jnp.pad(x_nhwc, ((0, 0), (1, 1), (1, 1), (0, 0)))           # (N, H+2, W+2, C)
    if nb == 1:
        slabs = xp                                                   # no extra HBM round trip
    else:
        # TODO(synk): express the 2-row halo with element-offset BlockSpec indexing or a
        # manual double-buffered DMA instead of materializing overlapping slabs in HBM.
        slabs = jnp.stack([xp[:, i * bp:i * bp + bp + 2] for i in range(nb)], axis=1)
        slabs = slabs.reshape(N * nb, bp + 2, W + 2, C)

    # ---- sub-pixel weights:
    # y[n,co,2p+ah,2q+aw] = bias[co]
    #   + sum_{dh,dw,ci} xpad[n, p+ah+dh, q+aw+dw, ci] * weight[ci, co, 3-ah-2dh, 3-aw-2dw]
    a = jnp.arange(2)
    d = jnp.arange(2)
    kidx = 3 - a[:, None] - 2 * d[None, :]                           # kidx[a, d]
    w_g = weight[:, :, kidx[:, None, :, None], kidx[None, :, None, :]]  # (ci,co,ah,aw,dh,dw)
    w_sub = jnp.transpose(w_g, (2, 3, 4, 5, 0, 1))                   # (ah,aw,dh,dw,ci,co)

    if merged:
        # (ah, dh, s, ci, aw, co): zero rows for taps a given aw parity does not use
        w_m = jnp.zeros((2, 2, 3, C, 2, C), dtype=jnp.float32)
        for ah in range(2):
            for aw in range(2):
                for dh in range(2):
                    for dw in range(2):
                        w_m = w_m.at[ah, dh, aw + dw, :, aw, :].set(w_sub[ah, aw, dh, dw])
        w_arg = w_m.reshape(2, 6 * C, 2 * C).astype(cdt)
        b_arg = jnp.tile(bias.astype(jnp.float32), 2).reshape(1, 2 * C)
        w_spec = pl.BlockSpec((2, 6 * C, 2 * C), lambda s: (0, 0, 0))
        b_spec = pl.BlockSpec((1, 2 * C), lambda s: (0, 0))
    else:
        w_arg = w_sub.reshape(2, 2, 4 * C, C).astype(cdt)
        b_arg = bias.astype(jnp.float32).reshape(1, C)
        w_spec = pl.BlockSpec((2, 2, 4 * C, C), lambda s: (0, 0, 0, 0))
        b_spec = pl.BlockSpec((1, C), lambda s: (0, 0))

    kern = functools.partial(_upsample_kernel, bp=bp, W=W, C=C, merged=merged)
    out = pl.pallas_call(
        kern,
        out_shape=jax.ShapeDtypeStruct((N * nb, bp, 2, W, 2 * C), out_dtype),
        grid_spec=pltpu.PrefetchScalarGridSpec(
            num_scalar_prefetch=0,
            grid=(N * nb,),
            in_specs=[
                pl.BlockSpec((1, bp + 2, W + 2, C), lambda s: (s, 0, 0, 0)),
                w_spec,
                b_spec,
            ],
            out_specs=pl.BlockSpec((1, bp, 2, W, 2 * C), lambda s: (s, 0, 0, 0, 0)),
        ),
        compiler_params=pltpu.CompilerParams(
            dimension_semantics=("parallel",),
            vmem_limit_bytes=int(vmem_limit),
        ),
    )(slabs, w_arg, b_arg)

    # (N*nb, bp, 2, W, 2C) row-major == (N, 2H, 2W, C): metadata-only reshape (the
    # pixel-shuffle interleave is already baked into the store layout). The only
    # remaining output-sized copy is the NHWC -> NCHW transpose the module requires.
    y_nhwc = out.reshape(N, 2 * H, 2 * W, C)
    return jnp.transpose(y_nhwc, (0, 3, 1, 2))


if __name__ == "__main__":
    key = jax.random.PRNGKey(0)
    kx, kw_, kb = jax.random.split(key, 3)

    N, C, H, W = 2, 4, 16, 16
    x = jax.random.normal(kx, (N, C, H, W), dtype=jnp.float32)
    t = jnp.zeros((N,), dtype=jnp.float32)   # ignored by the module

    # deterministic params with nn.ConvTranspose2d(C, C, 4, 2, 1)'s shapes
    fan = C * 4 * 4
    bound = 1.0 / np.sqrt(fan)
    weight = jax.random.uniform(kw_, (C, C, 4, 4), minval=-bound, maxval=bound,
                                dtype=jnp.float32)
    bias = jax.random.uniform(kb, (C,), minval=-bound, maxval=bound,
                              dtype=jnp.float32)

    y = jax.jit(upsample_forward)(x, t, weight, bias)
    y = jax.block_until_ready(y)
    assert y.shape == (N, C, 2 * H, 2 * W), y.shape

    # independent reference: XLA input-dilated conv == ConvTranspose2d(stride=2, pad=1, k=4),
    # with the same bf16 operand rounding as the kernel and f32 accumulation.
    x_ref = jnp.transpose(x, (0, 2, 3, 1)).astype(jnp.bfloat16)
    wf = jnp.transpose(jnp.flip(weight, axis=(2, 3)), (2, 3, 0, 1)).astype(jnp.bfloat16)
    ref = jax.lax.conv_general_dilated(
        x_ref, wf, window_strides=(1, 1), padding=((2, 2), (2, 2)),
        lhs_dilation=(2, 2), dimension_numbers=("NHWC", "HWIO", "NHWC"),
        preferred_element_type=jnp.float32) + bias
    ref = jnp.transpose(ref, (0, 3, 1, 2))
    err = float(jnp.max(jnp.abs(y - ref)))
    assert err < 2e-2, f"max abs err {err}"

    print("KERNEL_OK")
</pallas_src>

<mosaic_0001>
module attributes {stable_mosaic.version = 11 : i64} {
  func.func @_upsample_kernel(%arg0: i32, %arg1: memref<1x18x18x4xbf16, #tpu.memory_space<vmem>>, %arg2: memref<2x24x8xbf16, #tpu.memory_space<vmem>>, %arg3: memref<1x8xf32, #tpu.memory_space<vmem>>, %arg4: memref<1x16x2x16x8xf32, #tpu.memory_space<vmem>>) attributes {dimension_semantics = [#tpu.dimension_semantics<parallel>], iteration_bounds = array<i64: 2>, scalar_prefetch = 0 : i64, scratch_operands = 0 : i64, tpu.core_type = #tpu.core_type<tc>, window_params = [{transform_indices = @transform_0, window_bounds = array<i64: 1, 18, 18, 4>}, {pipeline_mode = #tpu.pipeline_mode<synchronous>, transform_indices = @transform_1, window_bounds = array<i64: 2, 24, 8>}, {pipeline_mode = #tpu.pipeline_mode<synchronous>, transform_indices = @transform_2, window_bounds = array<i64: 1, 8>}, {transform_indices = @transform_3, window_bounds = array<i64: 1, 16, 2, 16, 8>}]} {
    %c0 = arith.constant 0 : index
    %c0_0 = arith.constant 0 : index
    %c0_1 = arith.constant 0 : index
    %c0_2 = arith.constant 0 : index
    %0 = vector.load %arg1[%c0, %c0_0, %c0_1, %c0_2] : memref<1x18x18x4xbf16, #tpu.memory_space<vmem>>, vector<1x18x18x4xbf16>
    %1 = vector.shape_cast %0 : vector<1x18x18x4xbf16> to vector<18x18x4xbf16>
    %2 = vector.extract_strided_slice %1 {offsets = [0, 0, 0], sizes = [18, 16, 4], strides = [1, 1, 1]} : vector<18x18x4xbf16> to vector<18x16x4xbf16>
    %3 = vector.extract_strided_slice %1 {offsets = [0, 1, 0], sizes = [18, 16, 4], strides = [1, 1, 1]} : vector<18x18x4xbf16> to vector<18x16x4xbf16>
    %4 = vector.extract_strided_slice %1 {offsets = [0, 2, 0], sizes = [18, 16, 4], strides = [1, 1, 1]} : vector<18x18x4xbf16> to vector<18x16x4xbf16>
    %5 = tpu.concatenate %2, %3, %4 in 2 : vector<18x16x4xbf16>, vector<18x16x4xbf16>, vector<18x16x4xbf16> -> vector<18x16x12xbf16>
    %6 = vector.extract_strided_slice %5 {offsets = [0, 0, 0], sizes = [16, 16, 12], strides = [1, 1, 1]} : vector<18x16x12xbf16> to vector<16x16x12xbf16>
    %7 = vector.extract_strided_slice %5 {offsets = [1, 0, 0], sizes = [16, 16, 12], strides = [1, 1, 1]} : vector<18x16x12xbf16> to vector<16x16x12xbf16>
    %8 = tpu.concatenate %6, %7 in 2 : vector<16x16x12xbf16>, vector<16x16x12xbf16> -> vector<16x16x24xbf16>
    %9 = vector.shape_cast %8 : vector<16x16x24xbf16> to vector<256x24xbf16>
    %c0_3 = arith.constant 0 : index
    %c0_4 = arith.constant 0 : index
    %c0_5 = arith.constant 0 : index
    %10 = vector.load %arg2[%c0_3, %c0_4, %c0_5] : memref<2x24x8xbf16, #tpu.memory_space<vmem>>, vector<1x24x8xbf16>
    %11 = vector.shape_cast %10 : vector<1x24x8xbf16> to vector<24x8xbf16>
    %cst = arith.constant dense<0.000000e+00> : vector<256x8xf32>
    %12 = tpu.matmul %9, %11, %cst {dimension_numbers = #tpu.dot_dimension_numbers<[1], [0], [0], [1], [0, 0, 1, 1], [], []>} : vector<256x24xbf16>, vector<24x8xbf16>, vector<256x8xf32> -> vector<256x8xf32>
    %c0_6 = arith.constant 0 : index
    %c0_7 = arith.constant 0 : index
    %13 = vector.load %arg3[%c0_6, %c0_7] : memref<1x8xf32, #tpu.memory_space<vmem>>, vector<1x8xf32>
    %14 = vector.broadcast %13 : vector<1x8xf32> to vector<256x8xf32>
    %15 = arith.addf %12, %14 : vector<256x8xf32>
    %16 = vector.shape_cast %15 : vector<256x8xf32> to vector<16x16x8xf32>
    %c0_8 = arith.constant 0 : index
    %c0_9 = arith.constant 0 : index
    %c0_10 = arith.constant 0 : index
    %c0_11 = arith.constant 0 : index
    %c0_12 = arith.constant 0 : index
    %17 = vector.load %arg4[%c0_8, %c0_9, %c0_10, %c0_11, %c0_12] : memref<1x16x2x16x8xf32, #tpu.memory_space<vmem>>, vector<1x16x1x16x8xf32>
    %18 = vector.shape_cast %17 : vector<1x16x1x16x8xf32> to vector<16x16x8xf32>
    %19 = vector.shape_cast %16 : vector<16x16x8xf32> to vector<1x16x1x16x8xf32>
    tpu.vector_store %arg4[%c0_8, %c0_9, %c0_10, %c0_11, %c0_12], %19 {strides = array<i32>} : memref<1x16x2x16x8xf32, #tpu.memory_space<vmem>>, vector<1x16x1x16x8xf32>,
    %20 = vector.extract_strided_slice %5 {offsets = [1, 0, 0], sizes = [16, 16, 12], strides = [1, 1, 1]} : vector<18x16x12xbf16> to vector<16x16x12xbf16>
    %21 = vector.extract_strided_slice %5 {offsets = [2, 0, 0], sizes = [16, 16, 12], strides = [1, 1, 1]} : vector<18x16x12xbf16> to vector<16x16x12xbf16>
    %22 = tpu.concatenate %20, %21 in 2 : vector<16x16x12xbf16>, vector<16x16x12xbf16> -> vector<16x16x24xbf16>
    %23 = vector.shape_cast %22 : vector<16x16x24xbf16> to vector<256x24xbf16>
    %c1 = arith.constant 1 : index
    %c0_13 = arith.constant 0 : index
    %c0_14 = arith.constant 0 : index
    %24 = vector.load %arg2[%c1, %c0_13, %c0_14] : memref<2x24x8xbf16, #tpu.memory_space<vmem>>, vector<1x24x8xbf16>
    %25 = vector.shape_cast %24 : vector<1x24x8xbf16> to vector<24x8xbf16>
    %cst_15 = arith.constant dense<0.000000e+00> : vector<256x8xf32>
    %26 = tpu.matmul %23, %25, %cst_15 {dimension_numbers = #tpu.dot_dimension_numbers<[1], [0], [0], [1], [0, 0, 1, 1], [], []>} : vector<256x24xbf16>, vector<24x8xbf16>, vector<256x8xf32> -> vector<256x8xf32>
    %c0_16 = arith.constant 0 : index
    %c0_17 = arith.constant 0 : index
    %27 = vector.load %arg3[%c0_16, %c0_17] : memref<1x8xf32, #tpu.memory_space<vmem>>, vector<1x8xf32>
    %28 = vector.broadcast %27 : vector<1x8xf32> to vector<256x8xf32>
    %29 = arith.addf %26, %28 : vector<256x8xf32>
    %30 = vector.shape_cast %29 : vector<256x8xf32> to vector<16x16x8xf32>
    %c0_18 = arith.constant 0 : index
    %c0_19 = arith.constant 0 : index
    %c1_20 = arith.constant 1 : index
    %c0_21 = arith.constant 0 : index
    %c0_22 = arith.constant 0 : index
    %31 = vector.load %arg4[%c0_18, %c0_19, %c1_20, %c0_21, %c0_22] : memref<1x16x2x16x8xf32, #tpu.memory_space<vmem>>, vector<1x16x1x16x8xf32>
    %32 = vector.shape_cast %31 : vector<1x16x1x16x8xf32> to vector<16x16x8xf32>
    %33 = vector.shape_cast %30 : vector<16x16x8xf32> to vector<1x16x1x16x8xf32>
    tpu.vector_store %arg4[%c0_18, %c0_19, %c1_20, %c0_21, %c0_22], %33 {strides = array<i32>} : memref<1x16x2x16x8xf32, #tpu.memory_space<vmem>>, vector<1x16x1x16x8xf32>,
    return
  }
  func.func @transform_0(%arg0: i32) -> (i32, i32, i32, i32) {
    %c0_i32 = arith.constant 0 : i32
    %c0_i32_0 = arith.constant 0 : i32
    %c0_i32_1 = arith.constant 0 : i32
    %c0_i32_2 = arith.constant 0 : i32
    return %arg0, %c0_i32, %c0_i32_0, %c0_i32_1 : i32, i32, i32, i32
  }
  func.func @transform_1(%arg0: i32) -> (i32, i32, i32) {
    %c0_i32 = arith.constant 0 : i32
    %c0_i32_0 = arith.constant 0 : i32
    %c0_i32_1 = arith.constant 0 : i32
    %c0_i32_2 = arith.constant 0 : i32
    return %c0_i32, %c0_i32_0, %c0_i32_1 : i32, i32, i32
  }
  func.func @transform_2(%arg0: i32) -> (i32, i32) {
    %c0_i32 = arith.constant 0 : i32
    %c0_i32_0 = arith.constant 0 : i32
    %c0_i32_1 = arith.constant 0 : i32
    return %c0_i32, %c0_i32_0 : i32, i32
  }
  func.func @transform_3(%arg0: i32) -> (i32, i32, i32, i32, i32) {
    %c0_i32 = arith.constant 0 : i32
    %c0_i32_0 = arith.constant 0 : i32
    %c0_i32_1 = arith.constant 0 : i32
    %c0_i32_2 = arith.constant 0 : i32
    %c0_i32_3 = arith.constant 0 : i32
    return %arg0, %c0_i32, %c0_i32_0, %c0_i32_1, %c0_i32_2 : i32, i32, i32, i32, i32
  }
}

</mosaic_0001>

<bundles_post_ra>
// kernel: tile.8
= control target key start
LH: loop header
LB: loop body
LE: loop exit
PB: predicated region body
PF: predicated region fallthrough
CT: control target
= control target key end

     0   :  { %s22_s0 = inlined_call_operand.vmem [shape: f32[4], index: 0, kind: input, shape index: {}]   ;;  %s23_s1 = inlined_call_operand.vmem [shape: f32[2,4], index: 1, kind: output, shape index: {}]  }
   0x1   :  { %v4_v0 = vld [vmem:[%s22_s0] ss:$0 sm:$0xff] }
   0x2   :  { %5 = vst [vmem:[%s23_s1] sm:$0x3] %v4_v0 }

// kernel: tile.9
= control target key start
LH: loop header
LB: loop body
LE: loop exit
PB: predicated region body
PF: predicated region fallthrough
CT: control target
= control target key end

     0   :  { %vm8_vm0 = vcmask 31744   ;;  %vm14_vm1 = vcmask 64544   ;;  %s42_s0 = inlined_call_operand.vmem [shape: f32[2,4], index: 0, kind: input, shape index: {}]   ;;  %s43_s1 = inlined_call_operand.vmem [shape: f32[1,8], index: 1, kind: output, shape index: {}]  }
   0x1   :  { %v5_v0 = vld [vmem:[%s42_s0] sm:$0x3]  ;;  %s25_s0 = smov 4  }
   0x2   :  { %6 = vst [vmem:[#allocation1] sm:$0x3] %v5_v0 }
   0x9   :  { %v11_v1 = vld [vmem:[#allocation1 + $0x1] sm:$0x1]   ;;  %v7_v2 = vld [vmem:[#allocation1] sm:$0x1]  }
   0xa   :  { %12 = vrot.lane.b32.xlu0 %v11_v1, %s25_s0  ;;  %9 = vst.msk [vmem:[#allocation0] sm:$0x1] %vm8_vm0, %v7_v2  }
  0x7c   :  { %v13_v3 = vpop.permute.xlu0 %12  }
  0x7d   :  { %15 = vst.msk [vmem:[#allocation0] sm:$0x1] %vm14_vm1, %v13_v3  }
  0x84   :  { %v20_v4 = vld [vmem:[#allocation0] sm:$0x1] }
  0x85   :  { %23 = vst [vmem:[%s43_s1] sm:$0x1] %v20_v4 }

// kernel: upsample_forward.1
= control target key start
LH: loop header
LB: loop body
LE: loop exit
PB: predicated region body
PF: predicated region fallthrough
CT: control target
= control target key end

     0   :  { %s1710_s12 = smov 0   ;;  %s2334_s0 = inlined_call_operand.vmem [shape: bf16[2,18,18,4], index: 0, kind: input, shape index: {}]   ;;  %s2335_s1 = inlined_call_operand.vmem [shape: bf16[2,24,8], index: 1, kind: input, shape index: {}]   ;;  %s2336_s2 = inlined_call_operand.vmem [shape: f32[1,8], index: 2, kind: input, shape index: {}]   ;;  %s2337_s3 = inlined_call_operand.vmem [shape: f32[2,16,2,16,8], index: 3, kind: output, shape index: {}]  }
   0x1 LB: > { %s1397_s13 = sadd.s32 4294967295, %s1685_s12   ;;  %p1401_p0 = scmp.ge.s32.totalorder %s1685_s12, 1  ;;  %s1685_s12 = sphi %s1710_s12, %s13_s12  }
   0x2   : > { %p137_p1 = scmp.lt.s32.totalorder %s1685_s12, 3 }
   0x4   : > { %p138_p2 = pnand %p1401_p0, %p137_p1 }
   0x5   : > { %p161_p3 = scmp.lt.s32.totalorder (!%p138_p2), %s1397_s13, 1  ;;  %s1687_s18 = smov (!%p138_p2), 8  }
   0x6   : > { %141 = sbr.rel (%p138_p2) target bundleno = 523 (0x20b), region = 32  ;;  %s1688_s19 = smov (!%p138_p2), 4  }
   0x7   : > { %s1689_s28 = smov (!%p138_p2), 12  }
   0xb   : > { %s2339_s13 = smov (!%p161_p3, %s1397_s13), 1  ;;  %vm623_vm0 = vcmask 1046528   ;;  %vm370_vm1 = vsmask.f32 7424  ;;  %vm921_vm2 = vcmask 1043456   ;;  %vm714_vm3 = vcmask 31744  }
   0xc   : > { %s1627_s14 = smul.u32 216, %s2339_s13  ;;  %vm751_vm4 = vcmask 64512   ;;  %vm836_vm5 = vcmask 97280   ;;  %vm888_vm6 = vcmask 195584   ;;  %s1516_s29 = sshll.u32 %s2339_s13, 9 }
   0xd   : > { %s2137_s7 = scalar_lea.vmem %s2337_s3, %s1516_s29 }
   0xe   : > { %s1724_s17 = scalar_lea.vmem %s2334_s0, %s1627_s14 }
   0xf   : > { %v1727_v0 = vld [vmem:[%s1724_s17 + $0x18] sm:$0xff]   ;;  %v1640_v1 = vld [vmem:[%s1724_s17 + $0x20] ss:$0 sps:$4 sm:$0x11]   ;;  %v1731_v2 = vld [vmem:[%s1724_s17 + $0xc] sm:$0xff]  }
  0x10   : > { %v630_v3 = vrot.slane %v1727_v0, 1  ;;  %v631_v4 = vrot.slane %v1640_v1, 1  ;;  %v1642_v5 = vld [vmem:[%s1724_s17 + $0x14] ss:$0 sps:$4 sm:$0x11]   ;;  %v627_v7 = vrot.slane %v1731_v2, 1 }
  0x11   : > { %v1736_v6 = vld [vmem:[%s1724_s17 + $0x30] sm:$0xff]   ;;  %v1740_v8 = vld [vmem:[%s1724_s17 + $0x24] sm:$0xff]   ;;  %v628_v10 = vrot.slane %v1642_v5, 1  ;;  %v1644_v11 = vld [vmem:[%s1724_s17 + $0x38] ss:$0 sps:$4 sm:$0x11]  }
  0x12   : > { %v632_v9 = vsel %vm623_vm0, %v630_v3, %v631_v4  ;;  %v636_v12 = vrot.slane %v1736_v6, 1  ;;  %v633_v13 = vrot.slane %v1740_v8, 1  ;;  %v637_v15 = vrot.slane %v1644_v11, 1  ;;  %v1646_v16 = vld [vmem:[%s1724_s17 + $0x2c] ss:$0 sps:$4 sm:$0x11]  }
  0x13   : > { %682 = vrot.lane.b32.xlu0 %v632_v9, %s1687_s18  ;;  %v629_v14 = vsel %vm623_vm0, %v627_v7, %v628_v10  ;;  %v634_v18 = vrot.slane %v1646_v16, 1  ;;  %v1752_v19 = vld [vmem:[%s1724_s17 + $0x3c] sm:$0xff]   ;;  %v1648_v20 = vld [vmem:[%s1724_s17 + $0x44] ss:$0 sps:$4 sm:$0x11]   ;;  %v384_v21 = vshrl.u32 %v1731_v2, 16 }
  0x14   : > { %680 = vrot.lane.b32.xlu1 %v629_v14, %s1687_s18  ;;  %v638_v17 = vsel %vm623_vm0, %v636_v12, %v637_v15  ;;  %v386_v22 = vshll.u32 %v1731_v2, 16  ;;  %v391_v23 = vshll.u32 %v1642_v5, 16  ;;  %v408_v24 = vshrl.u32 %v1740_v8, 16  ;;  %v1765_v34 = vld [vmem:[%s1724_s17 + $0x54] sm:$0xff]   ;;  %v1780_v52 = vld [vmem:[%s1724_s17 + $0x48] sm:$0xff]   ;;  %v1800_v14 = vld [vmem:[%s1724_s17 + $0x60] sm:$0xff]  }
  0x15   : > { %v410_v25 = vshll.u32 %v1740_v8, 16  ;;  %v635_v26 = vsel %vm623_vm0, %v633_v13, %v634_v18  ;;  %v639_v27 = vrot.slane %v1752_v19, 1  ;;  %v640_v28 = vrot.slane %v1648_v20, 1  ;;  %v1770_v39 = vld [vmem:[%s1724_s17 + $0x5c] ss:$0 sps:$4 sm:$0x11]  }
  0x16   : > { %v415_v29 = vshll.u32 %v1646_v16, 16  ;;  %v388_v30 = vrot.slane %v386_v22, 1  ;;  %v393_v31 = vrot.slane %v391_v23, 1  ;;  %v396_v33 = vshrl.u32 %v1727_v0, 16  ;;  %v1792_v7 = vld [vmem:[%s1724_s17 + $0x6c] sm:$0xff]  }
  0x17   : > { %686 = vrot.lane.b32.xlu0 %v638_v17, %s1687_s18  ;;  %v412_v32 = vrot.slane %v410_v25, 1  ;;  %v641_v35 = vsel %vm623_vm0, %v639_v27, %v640_v28  ;;  %v398_v37 = vshll.u32 %v1727_v0, 16  ;;  %v403_v38 = vshll.u32 %v1640_v1, 16  ;;  %v1652_v53 = vld [vmem:[%s1724_s17 + $0x50] ss:$0 sps:$4 sm:$0x11]  }
  0x18   : > { %684 = vrot.lane.b32.xlu1 %v635_v26, %s1687_s18  ;;  %v417_v36 = vrot.slane %v415_v29, 1  ;;  %v389_v40 = vor.u32 %v388_v30, %v384_v21  ;;  %v432_v42 = vshrl.u32 %v1752_v19, 16  ;;  %v434_v43 = vshll.u32 %v1752_v19, 16  ;;  %v1795_v9 = vld [vmem:[%s1724_s17 + $0x74] ss:$0 sps:$4 sm:$0x11]  }
  0x19   : > { %v413_v41 = vor.u32 %v412_v32, %v408_v24  ;;  %v400_v44 = vrot.slane %v398_v37, 1  ;;  %v405_v45 = vrot.slane %v403_v38, 1  ;;  %v439_v46 = vshll.u32 %v1648_v20, 16  ;;  %v1656_v23 = vld [vmem:[%s1724_s17 + $0x68] ss:$0 sps:$4 sm:$0x11]  }
  0x1a   : > { %v420_v47 = vshrl.u32 %v1736_v6, 16  ;;  %v394_v48 = vsel %vm370_vm1, %v389_v40, %v393_v31  ;;  %v436_v50 = vrot.slane %v434_v43, 1  ;;  %v422_v51 = vshll.u32 %v1736_v6, 16  ;;  %v1815_v30 = vld [vmem:[%s1724_s17 + $0x84] sm:$0xff]  }
  0x1b   : > { %v418_v49 = vsel %vm370_vm1, %v413_v41, %v417_v36  ;;  %589 = vrot.lane.b32.xlu0 %v394_v48, %s1688_s19  ;;  %v401_v54 = vor.u32 %v400_v44, %v396_v33  ;;  %v441_v55 = vrot.slane %v439_v46, 1  ;;  %v427_v56 = vshll.u32 %v1644_v11, 16  ;;  %v1820_v36 = vld [vmem:[%s1724_s17 + $0x78] sm:$0xff]   ;;  %v1660_v43 = vld [vmem:[%s1724_s17 + $0x80] ss:$0 sps:$4 sm:$0x11]  }
  0x1c   : > { %688 = vrot.lane.b32.xlu1 %v641_v35, %s1687_s18  ;;  %v456_v57 = vshrl.u32 %v1765_v34, 16  ;;  %v437_v58 = vor.u32 %v436_v50, %v432_v42  ;;  %v424_v59 = vrot.slane %v422_v51, 1  ;;  %v458_v60 = vshll.u32 %v1765_v34, 16 }
  0x1d   : > { %v463_v61 = vshll.u32 %v1770_v39, 16  ;;  %v406_v62 = vsel %vm370_vm1, %v401_v54, %v405_v45  ;;  %v429_v63 = vrot.slane %v427_v56, 1  ;;  %v444_v1 = vshrl.u32 %v1780_v52, 16 }
  0x1e   : > { %v446_v3 = vshll.u32 %v1780_v52, 16  ;;  %v425_v4 = vor.u32 %v424_v59, %v420_v47  ;;  %v460_v5 = vrot.slane %v458_v60, 1  ;;  %v442_v10 = vsel %vm370_vm1, %v437_v58, %v441_v55  ;;  %v1838_v58 = vld [vmem:[%s1724_s17 + $0x9c] sm:$0xff]   ;;  %v1841_v59 = vld [vmem:[%s1724_s17 + $0x90] sm:$0xff]  }
  0x1f   : > { %591 = vrot.lane.b32.xlu0 %v406_v62, %s1688_s19  ;;  %v465_v11 = vrot.slane %v463_v61, 1  ;;  %v451_v13 = vshll.u32 %v1652_v53, 16  ;;  %v645_v17 = vrot.slane %v1765_v34, 1  ;;  %v646_v21 = vrot.slane %v1770_v39, 1 }
  0x20   : > { %593 = vrot.lane.b32.xlu1 %v418_v49, %s1688_s19  ;;  %v448_v12 = vrot.slane %v446_v3, 1  ;;  %v430_v15 = vsel %vm370_vm1, %v425_v4, %v429_v63  ;;  %v461_v16 = vor.u32 %v460_v5, %v456_v57  ;;  %v642_v22 = vrot.slane %v1780_v52, 1  ;;  %v1658_v39 = vld [vmem:[%s1724_s17 + $0x8c] ss:$0 sps:$4 sm:$0x11]  }
  0x21   : > { %v453_v20 = vrot.slane %v451_v13, 1  ;;  %v482_v24 = vshll.u32 %v1792_v7, 16  ;;  %v487_v25 = vshll.u32 %v1795_v9, 16  ;;  %v643_v27 = vrot.slane %v1652_v53, 1 }
  0x22   : > { %v449_v18 = vor.u32 %v448_v12, %v444_v1  ;;  %v466_v26 = vsel %vm370_vm1, %v461_v16, %v465_v11  ;;  %v480_v28 = vshrl.u32 %v1792_v7, 16  ;;  %v470_v29 = vshll.u32 %v1800_v14, 16  ;;  %v1662_v5 = vld [vmem:[%s1724_s17 + $0xa4] ss:$0 sps:$4 sm:$0x11]  }
  0x23   : > { %595 = vrot.lane.b32.xlu0 %v430_v15, %s1688_s19  ;;  %v484_v32 = vrot.slane %v482_v24, 1  ;;  %v468_v33 = vshrl.u32 %v1800_v14, 16  ;;  %v475_v35 = vshll.u32 %v1656_v23, 16  ;;  %v489_v38 = vrot.slane %v487_v25, 1  ;;  %v1863_v25 = vld [vmem:[%s1724_s17 + $0xa8] sm:$0xff]  }
  0x24   : > { %597 = vrot.lane.b32.xlu1 %v442_v10, %s1688_s19  ;;  %v454_v31 = vsel %vm370_vm1, %v449_v18, %v453_v20  ;;  %v472_v37 = vrot.slane %v470_v29, 1  ;;  %v647_v40 = vsel %vm623_vm0, %v645_v17, %v646_v21  ;;  %v506_v42 = vshll.u32 %v1815_v30, 16  ;;  %v1664_v12 = vld [vmem:[%s1724_s17 + $0x98] ss:$0 sps:$4 sm:$0x11]  }
  0x25   : > { %v485_v41 = vor.u32 %v484_v32, %v480_v28  ;;  %v644_v44 = vsel %vm623_vm0, %v642_v22, %v643_v27  ;;  %v477_v46 = vrot.slane %v475_v35, 1  ;;  %v494_v47 = vshll.u32 %v1820_v36, 16  ;;  %v1856_v20 = vld [vmem:[%s1724_s17 + $0xb4] sm:$0xff]  }
  0x26   : > { %v473_v45 = vor.u32 %v472_v37, %v468_v33  ;;  %v651_v48 = vrot.slane %v1792_v7, 1  ;;  %v652_v49 = vrot.slane %v1795_v9, 1  ;;  %v648_v50 = vrot.slane %v1800_v14, 1 }
  0x27   : > { %599 = vrot.lane.b32.xlu0 %v454_v31, %s1688_s19  ;;  %v511_v51 = vshll.u32 %v1658_v39, 16  ;;  %v499_v53 = vshll.u32 %v1660_v43, 16  ;;  %v490_v54 = vsel %vm370_vm1, %v485_v41, %v489_v38  ;;  %v649_v55 = vrot.slane %v1656_v23, 1  ;;  %v1666_v31 = vld [vmem:[%s1724_s17 + $0xbc] ss:$0 sps:$4 sm:$0x11]  }
  0x28   : > { %601 = vrot.lane.b32.xlu1 %v466_v26, %s1688_s19  ;;  %v504_v56 = vshrl.u32 %v1815_v30, 16  ;;  %v508_v57 = vrot.slane %v506_v42, 1  ;;  %v478_v60 = vsel %vm370_vm1, %v473_v45, %v477_v46  ;;  %v492_v61 = vshrl.u32 %v1820_v36, 16  ;;  %v1668_v42 = vld [vmem:[%s1724_s17 + $0xb0] ss:$0 sps:$4 sm:$0x11]  }
  0x29   : > { %v496_v62 = vrot.slane %v494_v47, 1  ;;  %v513_v63 = vrot.slane %v511_v51, 1  ;;  %v501_v1 = vrot.slane %v499_v53, 1  ;;  %v653_v3 = vsel %vm623_vm0, %v651_v48, %v652_v49  ;;  %v1877_v45 = vld [vmem:[%s1724_s17 + $0xcc] sm:$0xff]  }
  0x2a   : > { %v509_v4 = vor.u32 %v508_v57, %v504_v56  ;;  %v530_v9 = vshll.u32 %v1838_v58, 16  ;;  %v650_v10 = vsel %vm623_vm0, %v648_v50, %v649_v55  ;;  %v518_v13 = vshll.u32 %v1841_v59, 16  ;;  %v1883_v50 = vld [vmem:[%s1724_s17 + $0xc0] sm:$0xff]  }
  0x2b   : > { %690 = vrot.lane.b32.xlu0 %v644_v44, %s1687_s18  ;;  %v497_v11 = vor.u32 %v496_v62, %v492_v61  ;;  %v657_v15 = vrot.slane %v1815_v30, 1  ;;  %v658_v16 = vrot.slane %v1658_v39, 1  ;;  %v654_v17 = vrot.slane %v1820_v36, 1  ;;  %v1889_v56 = vld [vmem:[%s1724_s17] sm:$0xff]  }
  0x2c   : > { %692 = vrot.lane.b32.xlu1 %v647_v40, %s1687_s18  ;;  %v655_v18 = vrot.slane %v1660_v43, 1  ;;  %v514_v21 = vsel %vm370_vm1, %v509_v4, %v513_v63  ;;  %v528_v22 = vshrl.u32 %v1838_v58, 16  ;;  %v532_v23 = vrot.slane %v530_v9, 1  ;;  %v1674_v61 = vld [vmem:[%s1724_s17 + $0x8] ss:$0 sps:$4 sm:$0x11]  }
  0x2d   : > { %v535_v24 = vshll.u32 %v1662_v5, 16  ;;  %v502_v26 = vsel %vm370_vm1, %v497_v11, %v501_v1  ;;  %v516_v27 = vshrl.u32 %v1841_v59, 16  ;;  %v520_v28 = vrot.slane %v518_v13, 1  ;;  %v1672_v9 = vld [vmem:[%s1724_s17 + $0xd4] ss:$0 sps:$4 sm:$0x11]  }
  0x2e   : > { %v523_v29 = vshll.u32 %v1664_v12, 16  ;;  %v554_v32 = vshll.u32 %v1856_v20, 16  ;;  %v659_v33 = vsel %vm623_vm0, %v657_v15, %v658_v16  ;;  %v533_v35 = vor.u32 %v532_v23, %v528_v22  ;;  %v1670_v13 = vld [vmem:[%s1724_s17 + $0xc8] ss:$0 sps:$4 sm:$0x11]  }
  0x2f   : > { %603 = vrot.lane.b32.xlu0 %v478_v60, %s1688_s19  ;;  %v537_v37 = vrot.slane %v535_v24, 1  ;;  %v542_v38 = vshll.u32 %v1863_v25, 16  ;;  %v656_v39 = vsel %vm623_vm0, %v654_v17, %v655_v18  ;;  %v521_v40 = vor.u32 %v520_v28, %v516_v27 }
  0x30   : > { %605 = vrot.lane.b32.xlu1 %v490_v54, %s1688_s19  ;;  %v525_v41 = vrot.slane %v523_v29, 1  ;;  %v663_v43 = vrot.slane %v1838_v58, 1  ;;  %v664_v44 = vrot.slane %v1662_v5, 1  ;;  %v660_v46 = vrot.slane %v1841_v59, 1 }
  0x31   : > { %v552_v47 = vshrl.u32 %v1856_v20, 16  ;;  %v556_v48 = vrot.slane %v554_v32, 1  ;;  %v559_v49 = vshll.u32 %v1666_v31, 16  ;;  %v538_v51 = vsel %vm370_vm1, %v533_v35, %v537_v37 }
  0x32   : > { %v661_v53 = vrot.slane %v1664_v12, 1  ;;  %v540_v54 = vshrl.u32 %v1863_v25, 16  ;;  %v544_v55 = vrot.slane %v542_v38, 1  ;;  %v526_v57 = vsel %vm370_vm1, %v521_v40, %v525_v41 }
  0x33   : > { %694 = vrot.lane.b32.xlu0 %v650_v10, %s1687_s18  ;;  %v547_v60 = vshll.u32 %v1668_v42, 16  ;;  %v624_v62 = vrot.slane %v1889_v56, 1  ;;  %v557_v63 = vor.u32 %v556_v48, %v552_v47  ;;  %v561_v1 = vrot.slane %v559_v49, 1  ;;  %v1675_v49 = vld [vmem:[%s2335_s1 + $0x8] ss:$0 sps:$4 sm:$0xff]  }
  0x34   : > { %696 = vrot.lane.b32.xlu1 %v653_v3, %s1687_s18  ;;  %v625_v3 = vrot.slane %v1674_v61, 1  ;;  %v665_v4 = vsel %vm623_vm0, %v663_v43, %v664_v44  ;;  %v662_v5 = vsel %vm623_vm0, %v660_v46, %v661_v53  ;;  %v578_v10 = vshll.u32 %v1877_v45, 16  ;;  %1625 = vmatprep.subr.msk.bf16.mxu0 %vm921_vm2, %v1675_v49 }
  0x35   : > { %v545_v11 = vor.u32 %v544_v55, %v540_v54  ;;  %v549_v12 = vrot.slane %v547_v60, 1  ;;  %v566_v15 = vshll.u32 %v1883_v50, 16  ;;  %v669_v17 = vrot.slane %v1856_v20, 1 }
  0x36   : > { %v626_v16 = vsel %vm623_vm0, %v624_v62, %v625_v3  ;;  %v562_v18 = vsel %vm370_vm1, %v557_v63, %v561_v1  ;;  %v666_v22 = vrot.slane %v1863_v25, 1  ;;  %v667_v23 = vrot.slane %v1668_v42, 1 }
  0x37   : > { %607 = vrot.lane.b32.xlu0 %v502_v26, %s1688_s19  ;;  %v576_v24 = vshrl.u32 %v1877_v45, 16  ;;  %v580_v26 = vrot.slane %v578_v10, 1  ;;  %v583_v27 = vshll.u32 %v1672_v9, 16  ;;  %v374_v28 = vshll.u32 %v1889_v56, 16  ;;  %v1678_v10 = vld [vmem:[%s2335_s1 + $0xc] sm:$0xff]  }
  0x38   : > { %609 = vrot.lane.b32.xlu1 %v514_v21, %s1688_s19  ;;  %v670_v21 = vrot.slane %v1666_v31, 1  ;;  %v550_v29 = vsel %vm370_vm1, %v545_v11, %v549_v12  ;;  %v564_v32 = vshrl.u32 %v1883_v50, 16  ;;  %v571_v35 = vshll.u32 %v1670_v13, 16 }
  0x39   : > { %v372_v37 = vshrl.u32 %v1889_v56, 16  ;;  %v581_v38 = vor.u32 %v580_v26, %v576_v24  ;;  %v376_v40 = vrot.slane %v374_v28, 1  ;;  %v379_v41 = vshll.u32 %v1674_v61, 16 }
  0x3a   : > { %v671_v31 = vsel %vm623_vm0, %v669_v17, %v670_v21  ;;  %v668_v42 = vsel %vm623_vm0, %v666_v22, %v667_v23  ;;  %v573_v44 = vrot.slane %v571_v35, 1  ;;  %v672_v54 = vrot.slane %v1883_v50, 1 }
  0x3b   : > { %698 = vrot.lane.b32.xlu0 %v656_v39, %s1687_s18  ;;  %v585_v39 = vrot.slane %v583_v27, 1  ;;  %v377_v47 = vor.u32 %v376_v40, %v372_v37  ;;  %v381_v48 = vrot.slane %v379_v41, 1  ;;  %v673_v55 = vrot.slane %v1670_v13, 1 }
  0x3c   : > { %700 = vrot.lane.b32.xlu1 %v659_v33, %s1687_s18  ;;  %v568_v33 = vrot.slane %v566_v15, 1  ;;  %v675_v63 = vrot.slane %v1877_v45, 1  ;;  %v676_v1 = vrot.slane %v1672_v9, 1 }
  0x3d   : > { %v586_v46 = vsel %vm370_vm1, %v581_v38, %v585_v39  ;;  %v382_v61 = vsel %vm370_vm1, %v377_v47, %v381_v48  ;;  %v674_v62 = vsel %vm623_vm0, %v672_v54, %v673_v55 }
  0x3e   : > { %v569_v43 = vor.u32 %v568_v33, %v564_v32  ;;  %v677_v3 = vsel %vm623_vm0, %v675_v63, %v676_v1 }
  0x3f   : > { %611 = vrot.lane.b32.xlu0 %v526_v57, %s1688_s19  ;;  %v923_v57 = vsel %vm921_vm2, %v1675_v49, 0 }
  0x40   : > { %613 = vrot.lane.b32.xlu1 %v538_v51, %s1688_s19  ;;  %v1676_v51 = vld [vmem:[%s2335_s1 + $0x14] ss:$0 sps:$4 sm:$0xff]   ;;  %v574_v53 = vsel %vm370_vm1, %v569_v43, %v573_v44  ;;  %1554 = vmatpush3.bf16.msra.mxu0 %v923_v57 }
  0x41   : > { %1626 = vmatprep.subr.msk.bf16.mxu1 %vm921_vm2, %v1676_v51  ;;  %v1146_v60 = vsel %vm921_vm2, %v1676_v51, 0 }
  0x42   : > { %1590 = vmatpush3.bf16.msra.mxu1 %v1146_v60 }
  0x43   : > { %702 = vrot.lane.b32.xlu0 %v662_v5, %s1687_s18  ;;  %v1677_v5 = vld [vmem:[%s2335_s1] sm:$0xff]   ;;  %1591 = vmatprep.subr.bf16.mxu1 %v1678_v10 }
  0x44   : > { %704 = vrot.lane.b32.xlu1 %v665_v4, %s1687_s18  ;;  %1555 = vmatprep.subr.bf16.mxu0 %v1677_v5 }
  0x45   : > { %1556 = vmatpush3.bf16.msra.mxu0 %v1677_v5 }
  0x46   : > { %1592 = vmatpush3.bf16.msra.mxu1 %v1678_v10 }
  0x47   : > { %615 = vrot.lane.b32.xlu0 %v550_v29, %s1688_s19 }
  0x48   : > { %617 = vrot.lane.b32.xlu1 %v562_v18, %s1688_s19 }
  0x4b   : > { %706 = vrot.lane.b32.xlu0 %v668_v42, %s1687_s18 }
  0x4c   : > { %708 = vrot.lane.b32.xlu1 %v671_v31, %s1687_s18 }
  0x4f   : > { %619 = vrot.lane.b32.xlu0 %v574_v53, %s1688_s19 }
  0x50   : > { %621 = vrot.lane.b32.xlu1 %v586_v46, %s1688_s19 }
  0x53   : > { %710 = vrot.lane.b32.xlu0 %v674_v62, %s1687_s18 }
  0x54   : > { %587 = vrot.lane.b32.xlu1 %v382_v61, %s1688_s19 }
  0x57   : > { %712 = vrot.lane.b32.xlu0 %v677_v3, %s1687_s18 }
  0x58   : > { %678 = vrot.lane.b32.xlu1 %v626_v16, %s1687_s18 }
  0x85   : > { %v683_v4 = vpop.permute.xlu0 %682 }
  0x86   : > { %v681_v9 = vpop.permute.xlu1 %680 }
  0x89   : > { %v687_v11 = vpop.permute.xlu0 %686 }
  0x8a   : > { %v685_v12 = vpop.permute.xlu1 %684 }
  0x8d   : > { %v590_v15 = vpop.permute.xlu0 %589 }
  0x8e   : > { %v689_v13 = vpop.permute.xlu1 %688  ;;  %v718_v16 = vsel %vm714_vm3, %v1731_v2, %v590_v15 }
  0x8f   : > { %v1947_v17 = vsel %vm751_vm4, %v718_v16, %v681_v9 }
  0x90   : > { %804 = vrot.lane.b32.xlu0 %v1947_v17, %s1689_s28 }
  0x91   : > { %v592_v22 = vpop.permute.xlu0 %591 }
  0x92   : > { %v594_v18 = vpop.permute.xlu1 %593  ;;  %v720_v23 = vsel %vm714_vm3, %v1727_v0, %v592_v22 }
  0x93   : > { %v722_v21 = vsel %vm714_vm3, %v1740_v8, %v594_v18  ;;  %v1959_v2 = vsel %vm751_vm4, %v720_v23, %v683_v4 }
  0x94   : > { %v1956_v24 = vsel %vm751_vm4, %v722_v21, %v685_v12  ;;  %806 = vrot.lane.b32.xlu1 %v1959_v2, %s1689_s28 }
  0x95   : > { %808 = vrot.lane.b32.xlu0 %v1956_v24, %s1689_s28  ;;  %v596_v27 = vpop.permute.xlu0 %595 }
  0x96   : > { %v598_v26 = vpop.permute.xlu1 %597  ;;  %v724_v0 = vsel %vm714_vm3, %v1736_v6, %v596_v27 }
  0x97   : > { %v726_v8 = vsel %vm714_vm3, %v1752_v19, %v598_v26  ;;  %v1973_v29 = vsel %vm751_vm4, %v724_v0, %v687_v11 }
  0x98   : > { %v1970_v28 = vsel %vm751_vm4, %v726_v8, %v689_v13  ;;  %810 = vrot.lane.b32.xlu1 %v1973_v29, %s1689_s28 }
  0x99   : > { %812 = vrot.lane.b32.xlu0 %v1970_v28, %s1689_s28  ;;  %v600_v33 = vpop.permute.xlu0 %599 }
  0x9a   : > { %v602_v32 = vpop.permute.xlu1 %601  ;;  %v728_v6 = vsel %vm714_vm3, %v1780_v52, %v600_v33 }
  0x9b   : > { %v730_v19 = vsel %vm714_vm3, %v1765_v34, %v602_v32 }
  0x9d   : > { %v691_v31 = vpop.permute.xlu0 %690 }
  0x9e   : > { %v693_v35 = vpop.permute.xlu1 %692  ;;  %v1989_v38 = vsel %vm751_vm4, %v728_v6, %v691_v31 }
  0x9f   : > { %v1984_v37 = vsel %vm751_vm4, %v730_v19, %v693_v35  ;;  %814 = vrot.lane.b32.xlu1 %v1989_v38, %s1689_s28 }
  0xa0   : > { %816 = vrot.lane.b32.xlu0 %v1984_v37, %s1689_s28 }
  0xa1   : > { %v604_v40 = vpop.permute.xlu0 %603 }
  0xa2   : > { %v606_v39 = vpop.permute.xlu1 %605  ;;  %v732_v52 = vsel %vm714_vm3, %v1800_v14, %v604_v40 }
  0xa3   : > { %v734_v34 = vsel %vm714_vm3, %v1792_v7, %v606_v39 }
  0xa5   : > { %v695_v42 = vpop.permute.xlu0 %694 }
  0xa6   : > { %v697_v41 = vpop.permute.xlu1 %696  ;;  %v2003_v44 = vsel %vm751_vm4, %v732_v52, %v695_v42 }
  0xa7   : > { %v1998_v43 = vsel %vm751_vm4, %v734_v34, %v697_v41  ;;  %818 = vrot.lane.b32.xlu1 %v2003_v44, %s1689_s28 }
  0xa8   : > { %820 = vrot.lane.b32.xlu0 %v1998_v43, %s1689_s28 }
  0xa9   : > { %v608_v47 = vpop.permute.xlu0 %607 }
  0xaa   : > { %v610_v46 = vpop.permute.xlu1 %609  ;;  %v736_v14 = vsel %vm714_vm3, %v1820_v36, %v608_v47 }
  0xab   : > { %v738_v7 = vsel %vm714_vm3, %v1815_v30, %v610_v46 }
  0xad   : > { %v699_v49 = vpop.permute.xlu0 %698 }
  0xae   : > { %v701_v48 = vpop.permute.xlu1 %700  ;;  %v2017_v53 = vsel %vm751_vm4, %v736_v14, %v699_v49 }
  0xaf   : > { %v2012_v51 = vsel %vm751_vm4, %v738_v7, %v701_v48  ;;  %822 = vrot.lane.b32.xlu1 %v2017_v53, %s1689_s28 }
  0xb0   : > { %824 = vrot.lane.b32.xlu0 %v2012_v51, %s1689_s28 }
  0xb1   : > { %v612_v55 = vpop.permute.xlu0 %611 }
  0xb2   : > { %v614_v54 = vpop.permute.xlu1 %613  ;;  %v740_v36 = vsel %vm714_vm3, %v1841_v59, %v612_v55 }
  0xb3   : > { %v742_v30 = vsel %vm714_vm3, %v1838_v58, %v614_v54 }
  0xb5   : > { %v703_v60 = vpop.permute.xlu0 %702 }
  0xb6   : > { %v705_v57 = vpop.permute.xlu1 %704  ;;  %v2031_v62 = vsel %vm751_vm4, %v740_v36, %v703_v60 }
  0xb7   : > { %v2026_v61 = vsel %vm751_vm4, %v742_v30, %v705_v57  ;;  %826 = vrot.lane.b32.xlu1 %v2031_v62, %s1689_s28 }
  0xb8   : > { %828 = vrot.lane.b32.xlu0 %v2026_v61, %s1689_s28 }
  0xb9   : > { %v616_v1 = vpop.permute.xlu0 %615 }
  0xba   : > { %v618_v63 = vpop.permute.xlu1 %617  ;;  %v744_v59 = vsel %vm714_vm3, %v1863_v25, %v616_v1 }
  0xbb   : > { %v746_v58 = vsel %vm714_vm3, %v1856_v20, %v618_v63 }
  0xbd   : > { %v707_v4 = vpop.permute.xlu0 %706 }
  0xbe   : > { %v709_v3 = vpop.permute.xlu1 %708  ;;  %v2045_v10 = vsel %vm751_vm4, %v744_v59, %v707_v4 }
  0xbf   : > { %v2040_v5 = vsel %vm751_vm4, %v746_v58, %v709_v3  ;;  %830 = vrot.lane.b32.xlu1 %v2045_v10, %s1689_s28 }
  0xc0   : > { %832 = vrot.lane.b32.xlu0 %v2040_v5, %s1689_s28 }
  0xc1   : > { %v620_v9 = vpop.permute.xlu0 %619 }
  0xc2   : > { %v748_v20 = vsel %vm714_vm3, %v1883_v50, %v620_v9  ;;  %v622_v11 = vpop.permute.xlu1 %621 }
  0xc3   : > { %v750_v13 = vsel %vm714_vm3, %v1877_v45, %v622_v11 }
  0xc5   : > { %v711_v25 = vpop.permute.xlu0 %710 }
  0xc6   : > { %v2052_v12 = vsel %vm751_vm4, %v748_v20, %v711_v25  ;;  %v588_v18 = vpop.permute.xlu1 %587 }
  0xc7   : > { %834 = vrot.lane.b32.xlu1 %v2052_v12, %s1689_s28  ;;  %v716_v50 = vsel %vm714_vm3, %v1889_v56, %v588_v18 }
  0xc9   : > { %v713_v15 = vpop.permute.xlu0 %712 }
  0xca   : > { %v787_v16 = vsel %vm751_vm4, %v750_v13, %v713_v15  ;;  %v679_v21 = vpop.permute.xlu1 %678 }
  0xcb   : > { %1119 = vrot.lane.b32.xlu0 %v787_v16, %s1689_s28  ;;  %v753_v22 = vsel %vm751_vm4, %v716_v50, %v679_v21 }
 0x102   : > { %v805_v23 = vpop.permute.xlu0 %804 }
 0x103   : > { %v838_v26 = vsel %vm836_vm5, %v753_v22, %v805_v23 }
 0x104   : > { %1557 = vmatprep.mubr.msk.bf16.mxu0 %vm888_vm6, %v838_v26 }
 0x106   : > { %v807_v8 = vpop.permute.xlu1 %806 }
 0x107   : > { %v809_v45 = vpop.permute.xlu0 %808  ;;  %v840_v0 = vsel %vm836_vm5, %v1947_v17, %v807_v8 }
 0x108   : > { %v842_v27 = vsel %vm836_vm5, %v1959_v2, %v809_v45  ;;  %1558 = vmatmul.mubr.msk.bf16.vlgmr.msra.gmra.mxu0 %vm888_vm6, %v840_v0  ;;  %1593 = vmatprep.mubr.msk.bf16.mxu1 %vm888_vm6, %v840_v0 }
 0x109   : > { %1561 = vmatprep.mubr.msk.bf16.mxu0 %vm888_vm6, %v842_v27  ;;  %1594 = vmatmul.mubr.msk.bf16.vlgmr.msra.gmra.mxu1 %vm888_vm6, %v842_v27 }
 0x10a   : > { %v811_v56 = vpop.permute.xlu1 %810 }
 0x10b   : > { %v844_v32 = vsel %vm836_vm5, %v1956_v24, %v811_v56  ;;  %v813_v33 = vpop.permute.xlu0 %812 }
 0x10c   : > { %1597 = vmatprep.mubr.msk.bf16.mxu1 %vm888_vm6, %v844_v32  ;;  %v846_v2 = vsel %vm836_vm5, %v1973_v29, %v813_v33 }
 0x110   : > { %1562 = vmatmul.mubr.msk.bf16.gmra.mxu0 %vm888_vm6, %v844_v32 }
 0x111   : > { %1565 = vmatprep.mubr.msk.bf16.mxu0 %vm888_vm6, %v846_v2  ;;  %1598 = vmatmul.mubr.msk.bf16.gmra.mxu1 %vm888_vm6, %v846_v2  ;;  %v815_v17 = vpop.permute.xlu1 %814 }
 0x112   : > { %v848_v19 = vsel %vm836_vm5, %v1970_v28, %v815_v17  ;;  %v817_v6 = vpop.permute.xlu0 %816 }
 0x113   : > { %1601 = vmatprep.mubr.msk.bf16.mxu1 %vm888_vm6, %v848_v19  ;;  %v850_v24 = vsel %vm836_vm5, %v1989_v38, %v817_v6 }
 0x118   : > { %1566 = vmatmul.mubr.msk.bf16.gmra.mxu0 %vm888_vm6, %v848_v19 }
 0x119   : > { %1569 = vmatprep.mubr.msk.bf16.mxu0 %vm888_vm6, %v850_v24  ;;  %1602 = vmatmul.mubr.msk.bf16.gmra.mxu1 %vm888_vm6, %v850_v24  ;;  %v819_v29 = vpop.permute.xlu1 %818 }
 0x11a   : > { %v852_v35 = vsel %vm836_vm5, %v1984_v37, %v819_v29  ;;  %v821_v31 = vpop.permute.xlu0 %820 }
 0x11b   : > { %1605 = vmatprep.mubr.msk.bf16.mxu1 %vm888_vm6, %v852_v35  ;;  %v854_v28 = vsel %vm836_vm5, %v2003_v44, %v821_v31 }
 0x120   : > { %1570 = vmatmul.mubr.msk.bf16.gmra.mxu0 %vm888_vm6, %v852_v35 }
 0x121   : > { %1573 = vmatprep.mubr.msk.bf16.mxu0 %vm888_vm6, %v854_v28  ;;  %1606 = vmatmul.mubr.msk.bf16.gmra.mxu1 %vm888_vm6, %v854_v28  ;;  %v823_v38 = vpop.permute.xlu1 %822 }
 0x122   : > { %v856_v39 = vsel %vm836_vm5, %v1998_v43, %v823_v38  ;;  %v825_v40 = vpop.permute.xlu0 %824 }
 0x123   : > { %1609 = vmatprep.mubr.msk.bf16.mxu1 %vm888_vm6, %v856_v39  ;;  %v858_v37 = vsel %vm836_vm5, %v2017_v53, %v825_v40 }
 0x128   : > { %1574 = vmatmul.mubr.msk.bf16.gmra.mxu0 %vm888_vm6, %v856_v39 }
 0x129   : > { %1577 = vmatprep.mubr.msk.bf16.mxu0 %vm888_vm6, %v858_v37  ;;  %1610 = vmatmul.mubr.msk.bf16.gmra.mxu1 %vm888_vm6, %v858_v37  ;;  %v827_v34 = vpop.permute.xlu1 %826 }
 0x12a   : > { %v860_v52 = vsel %vm836_vm5, %v2012_v51, %v827_v34  ;;  %v829_v41 = vpop.permute.xlu0 %828  ;;  %v2132_v51 = vld [vmem:[%s2336_s2] ss:$0 sm:$0xff] }
 0x12b   : > { %1613 = vmatprep.mubr.msk.bf16.mxu1 %vm888_vm6, %v860_v52  ;;  %v862_v42 = vsel %vm836_vm5, %v2031_v62, %v829_v41 }
 0x130   : > { %1578 = vmatmul.mubr.msk.bf16.gmra.mxu0 %vm888_vm6, %v860_v52 }
 0x131   : > { %1581 = vmatprep.mubr.msk.bf16.mxu0 %vm888_vm6, %v862_v42  ;;  %1614 = vmatmul.mubr.msk.bf16.gmra.mxu1 %vm888_vm6, %v862_v42  ;;  %v831_v43 = vpop.permute.xlu1 %830 }
 0x132   : > { %v864_v44 = vsel %vm836_vm5, %v2026_v61, %v831_v43  ;;  %v833_v46 = vpop.permute.xlu0 %832 }
 0x133   : > { %1617 = vmatprep.mubr.msk.bf16.mxu1 %vm888_vm6, %v864_v44  ;;  %v866_v47 = vsel %vm836_vm5, %v2045_v10, %v833_v46 }
 0x138   : > { %1582 = vmatmul.mubr.msk.bf16.gmra.mxu0 %vm888_vm6, %v864_v44 }
 0x139   : > { %1585 = vmatprep.mubr.msk.bf16.mxu0 %vm888_vm6, %v866_v47  ;;  %1618 = vmatmul.mubr.msk.bf16.gmra.mxu1 %vm888_vm6, %v866_v47  ;;  %v835_v7 = vpop.permute.xlu1 %834 }
 0x13a   : > { %v868_v14 = vsel %vm836_vm5, %v2040_v5, %v835_v7 }
 0x13b   : > { %1621 = vmatprep.mubr.msk.bf16.mxu1 %vm888_vm6, %v868_v14 }
 0x13d   : > { %v1120_v48 = vpop.permute.xlu0 %1119 }
 0x13e   : > { %v1122_v49 = vsel %vm836_vm5, %v2052_v12, %v1120_v48 }
 0x140   : > { %1586 = vmatmul.mubr.msk.bf16.gmra.mxu0 %vm888_vm6, %v868_v14 }
 0x141   : > { %1622 = vmatmul.mubr.msk.bf16.gmra.mxu1 %vm888_vm6, %v1122_v49 }
 0x1c8   : > { %v1559_v53 = vpop.f32.mrf.mxu0 }
 0x1c9   : > { %v968_v54 = vadd.f32 %v1559_v53, %v2132_v51  ;;  %v1595_v55 = vpop.f32.mrf.mxu1 }
 0x1ca   : > { %v1191_v30 = vadd.f32 %v1595_v55, %v2132_v51  ;;  %v959_v36 = vpop.f32.mrf.mxu0 }
 0x1cb   : > { %1088 = vst.msk [vmem:[%s2137_s7 + $0x20] sm:$0xff] %vm751_vm4, %v968_v54  ;;  %v960_v57 = vadd.f32 %v2132_v51, %v959_v36  ;;  %v1182_v60 = vpop.f32.mrf.mxu1 }
 0x1cc   : > { %1484 = vst.msk [vmem:[%s2137_s7 + $0x30] sm:$0xff] %vm751_vm4, %v1191_v30  ;;  %v1183_v61 = vadd.f32 %v2132_v51, %v1182_v60  ;;  %v1560_v62 = vpop.f32.mrf.mxu0 }
 0x1cd   : > { %1086 = vst.msk [vmem:[%s2137_s7] sm:$0xff] %vm751_vm4, %v960_v57  ;;  %v971_v63 = vadd.f32 %v1560_v62, %v2132_v51  ;;  %v1596_v1 = vpop.f32.mrf.mxu1 }
 0x1ce   : > { %1482 = vst.msk [vmem:[%s2137_s7 + $0x10] sm:$0xff] %vm751_vm4, %v1183_v61  ;;  %v1194_v58 = vadd.f32 %v1596_v1, %v2132_v51  ;;  %v962_v59 = vpop.f32.mrf.mxu0 }
 0x1cf   : > { %1089 = vst.msk [vmem:[%s2137_s7 + $0x28] sm:$0xff] %vm751_vm4, %v971_v63  ;;  %v963_v3 = vadd.f32 %v2132_v51, %v962_v59  ;;  %v1185_v4 = vpop.f32.mrf.mxu1 }
 0x1d0   : > { %1485 = vst.msk [vmem:[%s2137_s7 + $0x38] sm:$0xff] %vm751_vm4, %v1194_v58  ;;  %v1186_v5 = vadd.f32 %v2132_v51, %v1185_v4  ;;  %v1563_v10 = vpop.f32.mrf.mxu0 }
 0x1d1   : > { %1087 = vst.msk [vmem:[%s2137_s7 + $0x8] sm:$0xff] %vm751_vm4, %v963_v3  ;;  %v984_v9 = vadd.f32 %v1563_v10, %v2132_v51  ;;  %v1599_v20 = vpop.f32.mrf.mxu1 }
 0x1d2   : > { %1483 = vst.msk [vmem:[%s2137_s7 + $0x18] sm:$0xff] %vm751_vm4, %v1186_v5  ;;  %v1207_v11 = vadd.f32 %v1599_v20, %v2132_v51  ;;  %v975_v25 = vpop.f32.mrf.mxu0 }
 0x1d3   : > { %1092 = vst.msk [vmem:[%s2137_s7 + $0x60] sm:$0xff] %vm751_vm4, %v984_v9  ;;  %v976_v12 = vadd.f32 %v2132_v51, %v975_v25  ;;  %v1198_v13 = vpop.f32.mrf.mxu1 }
 0x1d4   : > { %1488 = vst.msk [vmem:[%s2137_s7 + $0x70] sm:$0xff] %vm751_vm4, %v1207_v11  ;;  %v1199_v15 = vadd.f32 %v2132_v51, %v1198_v13  ;;  %v1564_v16 = vpop.f32.mrf.mxu0 }
 0x1d5   : > { %1090 = vst.msk [vmem:[%s2137_s7 + $0x40] sm:$0xff] %vm751_vm4, %v976_v12  ;;  %v987_v18 = vadd.f32 %v1564_v16, %v2132_v51  ;;  %v1600_v50 = vpop.f32.mrf.mxu1 }
 0x1d6   : > { %1486 = vst.msk [vmem:[%s2137_s7 + $0x50] sm:$0xff] %vm751_vm4, %v1199_v15  ;;  %v1210_v21 = vadd.f32 %v1600_v50, %v2132_v51  ;;  %v978_v22 = vpop.f32.mrf.mxu0 }
 0x1d7   : > { %1093 = vst.msk [vmem:[%s2137_s7 + $0x68] sm:$0xff] %vm751_vm4, %v987_v18  ;;  %v979_v23 = vadd.f32 %v2132_v51, %v978_v22  ;;  %v1201_v26 = vpop.f32.mrf.mxu1 }
 0x1d8   : > { %1489 = vst.msk [vmem:[%s2137_s7 + $0x78] sm:$0xff] %vm751_vm4, %v1210_v21  ;;  %v1202_v45 = vadd.f32 %v2132_v51, %v1201_v26  ;;  %v1567_v8 = vpop.f32.mrf.mxu0 }
 0x1d9   : > { %1091 = vst.msk [vmem:[%s2137_s7 + $0x48] sm:$0xff] %vm751_vm4, %v979_v23  ;;  %v1000_v27 = vadd.f32 %v1567_v8, %v2132_v51  ;;  %v1603_v0 = vpop.f32.mrf.mxu1 }
 0x1da   : > { %1487 = vst.msk [vmem:[%s2137_s7 + $0x58] sm:$0xff] %vm751_vm4, %v1202_v45  ;;  %v1223_v56 = vadd.f32 %v1603_v0, %v2132_v51  ;;  %v991_v32 = vpop.f32.mrf.mxu0 }
 0x1db   : > { %1096 = vst.msk [vmem:[%s2137_s7 + $0xa0] sm:$0xff] %vm751_vm4, %v1000_v27  ;;  %v992_v33 = vadd.f32 %v2132_v51, %v991_v32  ;;  %v1214_v2 = vpop.f32.mrf.mxu1 }
 0x1dc   : > { %1492 = vst.msk [vmem:[%s2137_s7 + $0xb0] sm:$0xff] %vm751_vm4, %v1223_v56  ;;  %v1215_v17 = vadd.f32 %v2132_v51, %v1214_v2  ;;  %v1568_v19 = vpop.f32.mrf.mxu0 }
 0x1dd   : > { %1094 = vst.msk [vmem:[%s2137_s7 + $0x80] sm:$0xff] %vm751_vm4, %v992_v33  ;;  %v1003_v6 = vadd.f32 %v1568_v19, %v2132_v51  ;;  %v1604_v24 = vpop.f32.mrf.mxu1 }
 0x1de   : > { %1490 = vst.msk [vmem:[%s2137_s7 + $0x90] sm:$0xff] %vm751_vm4, %v1215_v17  ;;  %v1226_v29 = vadd.f32 %v1604_v24, %v2132_v51  ;;  %v994_v35 = vpop.f32.mrf.mxu0 }
 0x1df   : > { %1097 = vst.msk [vmem:[%s2137_s7 + $0xa8] sm:$0xff] %vm751_vm4, %v1003_v6  ;;  %v995_v31 = vadd.f32 %v2132_v51, %v994_v35  ;;  %v1217_v28 = vpop.f32.mrf.mxu1 }
 0x1e0   : > { %1493 = vst.msk [vmem:[%s2137_s7 + $0xb8] sm:$0xff] %vm751_vm4, %v1226_v29  ;;  %v1218_v38 = vadd.f32 %v2132_v51, %v1217_v28  ;;  %v1571_v39 = vpop.f32.mrf.mxu0 }
 0x1e1   : > { %1095 = vst.msk [vmem:[%s2137_s7 + $0x88] sm:$0xff] %vm751_vm4, %v995_v31  ;;  %v1016_v40 = vadd.f32 %v1571_v39, %v2132_v51  ;;  %v1607_v37 = vpop.f32.mrf.mxu1 }
 0x1e2   : > { %1491 = vst.msk [vmem:[%s2137_s7 + $0x98] sm:$0xff] %vm751_vm4, %v1218_v38  ;;  %v1239_v34 = vadd.f32 %v1607_v37, %v2132_v51  ;;  %v1007_v52 = vpop.f32.mrf.mxu0 }
 0x1e3   : > { %1100 = vst.msk [vmem:[%s2137_s7 + $0xe0] sm:$0xff] %vm751_vm4, %v1016_v40  ;;  %v1008_v41 = vadd.f32 %v2132_v51, %v1007_v52  ;;  %v1230_v42 = vpop.f32.mrf.mxu1 }
 0x1e4   : > { %1496 = vst.msk [vmem:[%s2137_s7 + $0xf0] sm:$0xff] %vm751_vm4, %v1239_v34  ;;  %v1231_v43 = vadd.f32 %v2132_v51, %v1230_v42  ;;  %v1572_v44 = vpop.f32.mrf.mxu0 }
 0x1e5   : > { %1098 = vst.msk [vmem:[%s2137_s7 + $0xc0] sm:$0xff] %vm751_vm4, %v1008_v41  ;;  %v1019_v46 = vadd.f32 %v1572_v44, %v2132_v51  ;;  %v1608_v47 = vpop.f32.mrf.mxu1 }
 0x1e6   : > { %1494 = vst.msk [vmem:[%s2137_s7 + $0xd0] sm:$0xff] %vm751_vm4, %v1231_v43  ;;  %v1242_v7 = vadd.f32 %v1608_v47, %v2132_v51  ;;  %v1010_v14 = vpop.f32.mrf.mxu0 }
 0x1e7   : > { %1101 = vst.msk [vmem:[%s2137_s7 + $0xe8] sm:$0xff] %vm751_vm4, %v1019_v46  ;;  %v1011_v48 = vadd.f32 %v2132_v51, %v1010_v14  ;;  %v1233_v49 = vpop.f32.mrf.mxu1 }
 0x1e8   : > { %1497 = vst.msk [vmem:[%s2137_s7 + $0xf8] sm:$0xff] %vm751_vm4, %v1242_v7  ;;  %v1234_v53 = vadd.f32 %v2132_v51, %v1233_v49  ;;  %v1575_v54 = vpop.f32.mrf.mxu0 }
 0x1e9   : > { %1099 = vst.msk [vmem:[%s2137_s7 + $0xc8] sm:$0xff] %vm751_vm4, %v1011_v48  ;;  %v1032_v55 = vadd.f32 %v1575_v54, %v2132_v51  ;;  %v1611_v30 = vpop.f32.mrf.mxu1 }
 0x1ea   : > { %1495 = vst.msk [vmem:[%s2137_s7 + $0xd8] sm:$0xff] %vm751_vm4, %v1234_v53  ;;  %v1255_v36 = vadd.f32 %v1611_v30, %v2132_v51  ;;  %v1023_v57 = vpop.f32.mrf.mxu0 }
 0x1eb   : > { %1104 = vst.msk [vmem:[%s2137_s7 + $0x120] sm:$0xff] %vm751_vm4, %v1032_v55  ;;  %v1024_v60 = vadd.f32 %v2132_v51, %v1023_v57  ;;  %v1246_v61 = vpop.f32.mrf.mxu1 }
 0x1ec   : > { %1500 = vst.msk [vmem:[%s2137_s7 + $0x130] sm:$0xff] %vm751_vm4, %v1255_v36  ;;  %v1247_v62 = vadd.f32 %v2132_v51, %v1246_v61  ;;  %v1576_v63 = vpop.f32.mrf.mxu0 }
 0x1ed   : > { %1102 = vst.msk [vmem:[%s2137_s7 + $0x100] sm:$0xff] %vm751_vm4, %v1024_v60  ;;  %v1035_v1 = vadd.f32 %v1576_v63, %v2132_v51  ;;  %v1612_v58 = vpop.f32.mrf.mxu1 }
 0x1ee   : > { %1498 = vst.msk [vmem:[%s2137_s7 + $0x110] sm:$0xff] %vm751_vm4, %v1247_v62  ;;  %v1258_v59 = vadd.f32 %v1612_v58, %v2132_v51  ;;  %v1026_v3 = vpop.f32.mrf.mxu0 }
 0x1ef   : > { %1105 = vst.msk [vmem:[%s2137_s7 + $0x128] sm:$0xff] %vm751_vm4, %v1035_v1  ;;  %v1027_v4 = vadd.f32 %v2132_v51, %v1026_v3  ;;  %v1249_v5 = vpop.f32.mrf.mxu1 }
 0x1f0   : > { %1501 = vst.msk [vmem:[%s2137_s7 + $0x138] sm:$0xff] %vm751_vm4, %v1258_v59  ;;  %v1250_v10 = vadd.f32 %v2132_v51, %v1249_v5  ;;  %v1579_v9 = vpop.f32.mrf.mxu0 }
 0x1f1   : > { %1103 = vst.msk [vmem:[%s2137_s7 + $0x108] sm:$0xff] %vm751_vm4, %v1027_v4  ;;  %v1048_v20 = vadd.f32 %v1579_v9, %v2132_v51  ;;  %v1615_v11 = vpop.f32.mrf.mxu1 }
 0x1f2   : > { %1499 = vst.msk [vmem:[%s2137_s7 + $0x118] sm:$0xff] %vm751_vm4, %v1250_v10  ;;  %v1271_v25 = vadd.f32 %v1615_v11, %v2132_v51  ;;  %v1039_v12 = vpop.f32.mrf.mxu0 }
 0x1f3   : > { %1108 = vst.msk [vmem:[%s2137_s7 + $0x160] sm:$0xff] %vm751_vm4, %v1048_v20  ;;  %v1040_v13 = vadd.f32 %v2132_v51, %v1039_v12  ;;  %v1262_v15 = vpop.f32.mrf.mxu1 }
 0x1f4   : > { %1504 = vst.msk [vmem:[%s2137_s7 + $0x170] sm:$0xff] %vm751_vm4, %v1271_v25  ;;  %v1263_v16 = vadd.f32 %v2132_v51, %v1262_v15  ;;  %v1580_v18 = vpop.f32.mrf.mxu0 }
 0x1f5   : > { %1106 = vst.msk [vmem:[%s2137_s7 + $0x140] sm:$0xff] %vm751_vm4, %v1040_v13  ;;  %v1051_v50 = vadd.f32 %v1580_v18, %v2132_v51  ;;  %v1616_v21 = vpop.f32.mrf.mxu1 }
 0x1f6   : > { %1502 = vst.msk [vmem:[%s2137_s7 + $0x150] sm:$0xff] %vm751_vm4, %v1263_v16  ;;  %v1274_v22 = vadd.f32 %v1616_v21, %v2132_v51  ;;  %v1042_v23 = vpop.f32.mrf.mxu0 }
 0x1f7   : > { %1109 = vst.msk [vmem:[%s2137_s7 + $0x168] sm:$0xff] %vm751_vm4, %v1051_v50  ;;  %v1043_v26 = vadd.f32 %v2132_v51, %v1042_v23  ;;  %v1265_v45 = vpop.f32.mrf.mxu1 }
 0x1f8   : > { %1505 = vst.msk [vmem:[%s2137_s7 + $0x178] sm:$0xff] %vm751_vm4, %v1274_v22  ;;  %v1266_v8 = vadd.f32 %v2132_v51, %v1265_v45  ;;  %v1583_v27 = vpop.f32.mrf.mxu0 }
 0x1f9   : > { %1107 = vst.msk [vmem:[%s2137_s7 + $0x148] sm:$0xff] %vm751_vm4, %v1043_v26  ;;  %v1064_v0 = vadd.f32 %v1583_v27, %v2132_v51  ;;  %v1619_v56 = vpop.f32.mrf.mxu1 }
 0x1fa   : > { %1503 = vst.msk [vmem:[%s2137_s7 + $0x158] sm:$0xff] %vm751_vm4, %v1266_v8  ;;  %v1287_v32 = vadd.f32 %v1619_v56, %v2132_v51  ;;  %v1055_v33 = vpop.f32.mrf.mxu0 }
 0x1fb   : > { %1112 = vst.msk [vmem:[%s2137_s7 + $0x1a0] sm:$0xff] %vm751_vm4, %v1064_v0  ;;  %v1056_v2 = vadd.f32 %v2132_v51, %v1055_v33  ;;  %v1278_v17 = vpop.f32.mrf.mxu1 }
 0x1fc   : > { %1508 = vst.msk [vmem:[%s2137_s7 + $0x1b0] sm:$0xff] %vm751_vm4, %v1287_v32  ;;  %v1279_v19 = vadd.f32 %v2132_v51, %v1278_v17  ;;  %v1584_v6 = vpop.f32.mrf.mxu0 }
 0x1fd   : > { %1110 = vst.msk [vmem:[%s2137_s7 + $0x180] sm:$0xff] %vm751_vm4, %v1056_v2  ;;  %v1067_v24 = vadd.f32 %v1584_v6, %v2132_v51  ;;  %v1620_v29 = vpop.f32.mrf.mxu1 }
 0x1fe   : > { %1506 = vst.msk [vmem:[%s2137_s7 + $0x190] sm:$0xff] %vm751_vm4, %v1279_v19  ;;  %v1290_v35 = vadd.f32 %v1620_v29, %v2132_v51  ;;  %v1058_v31 = vpop.f32.mrf.mxu0 }
 0x1ff   : > { %1113 = vst.msk [vmem:[%s2137_s7 + $0x1a8] sm:$0xff] %vm751_vm4, %v1067_v24  ;;  %v1059_v28 = vadd.f32 %v2132_v51, %v1058_v31  ;;  %v1281_v38 = vpop.f32.mrf.mxu1 }
 0x200   : > { %1509 = vst.msk [vmem:[%s2137_s7 + $0x1b8] sm:$0xff] %vm751_vm4, %v1290_v35  ;;  %v1282_v39 = vadd.f32 %v2132_v51, %v1281_v38  ;;  %v1587_v40 = vpop.f32.mrf.mxu0 }
 0x201   : > { %1111 = vst.msk [vmem:[%s2137_s7 + $0x188] sm:$0xff] %vm751_vm4, %v1059_v28  ;;  %v1080_v37 = vadd.f32 %v1587_v40, %v2132_v51  ;;  %v1623_v34 = vpop.f32.mrf.mxu1 }
 0x202   : > { %1507 = vst.msk [vmem:[%s2137_s7 + $0x198] sm:$0xff] %vm751_vm4, %v1282_v39  ;;  %v1303_v52 = vadd.f32 %v1623_v34, %v2132_v51  ;;  %v1071_v41 = vpop.f32.mrf.mxu0 }
 0x203   : > { %1116 = vst.msk [vmem:[%s2137_s7 + $0x1e0] sm:$0xff] %vm751_vm4, %v1080_v37  ;;  %v1072_v42 = vadd.f32 %v2132_v51, %v1071_v41  ;;  %v1294_v43 = vpop.f32.mrf.mxu1 }
 0x204   : > { %1512 = vst.msk [vmem:[%s2137_s7 + $0x1f0] sm:$0xff] %vm751_vm4, %v1303_v52  ;;  %v1295_v44 = vadd.f32 %v2132_v51, %v1294_v43  ;;  %v1588_v46 = vpop.f32.mrf.mxu0 }
 0x205   : > { %1114 = vst.msk [vmem:[%s2137_s7 + $0x1c0] sm:$0xff] %vm751_vm4, %v1072_v42  ;;  %v1083_v47 = vadd.f32 %v1588_v46, %v2132_v51  ;;  %v1624_v7 = vpop.f32.mrf.mxu1 }
 0x206   : > { %1510 = vst.msk [vmem:[%s2137_s7 + $0x1d0] sm:$0xff] %vm751_vm4, %v1295_v44  ;;  %v1306_v14 = vadd.f32 %v1624_v7, %v2132_v51  ;;  %v1074_v48 = vpop.f32.mrf.mxu0 }
 0x207   : > { %1117 = vst.msk [vmem:[%s2137_s7 + $0x1e8] sm:$0xff] %vm751_vm4, %v1083_v47  ;;  %v1075_v49 = vadd.f32 %v2132_v51, %v1074_v48  ;;  %v1297_v53 = vpop.f32.mrf.mxu1 }
 0x208   : > { %1513 = vst.msk [vmem:[%s2137_s7 + $0x1f8] sm:$0xff] %vm751_vm4, %v1306_v14  ;;  %v1298_v54 = vadd.f32 %v2132_v51, %v1297_v53 }
 0x209   : > { %1115 = vst.msk [vmem:[%s2137_s7 + $0x1c8] sm:$0xff] %vm751_vm4, %v1075_v49 }
 0x20a   : > { %1511 = vst.msk [vmem:[%s2137_s7 + $0x1d8] sm:$0xff] %vm751_vm4, %v1298_v54 }
 0x20b PF: > { %s13_s12 = sadd.s32 1, %s1685_s12  }
 0x20c   : > { %p10_p4 = scmp.ge.s32.totalorder %s13_s12, 4  }
 0x20e   :  { %12 = sbr.rel (!%p10_p4) target bundleno = 1 (0x1), region = 64 }

</bundles_post_ra>
